<compile_context>
chip_gen: v5e
topology: v5e:2x2
jax: 0.10.0
libtpu: 0.0.40
codegen_flags: <defaults>
</compile_context>

<pallas_src>
import math

import jax
import jax.numpy as jnp
from jax import lax
from jax.experimental import pallas as pl
from jax.experimental.pallas import tpu as pltpu


_INV_SQRT2 = 1.0 / math.sqrt(2.0)


def _gelu_exact(x):
    # Matches torch.nn.functional.gelu default (erf-based, not tanh approx).
    return 0.5 * x * (1.0 + lax.erf(x * _INV_SQRT2))


def nonlinear_kernel(x_ref, w1_ref, b1_ref, w2_ref, b2_ref, o_ref):
    # x_ref:  (tm, D_in)     w1_ref: (H, D_in)     b1_ref: (H, 1)
    # w2_ref: (D_out, H)     b2_ref: (D_out, 1)    o_ref:  (D_out, tm)
    x = x_ref[...]

    # layer1: W1 x X^T, contracting the shared D_in axis -> (H, tm).
    # Weights keep the PyTorch (out, in) layout; M lands on the MXU-N axis.
    h = lax.dot_general(
        w1_ref[...], x,
        dimension_numbers=(((1,), (1,)), ((), ())),
        preferred_element_type=jnp.float32,
    )
    h = h + b1_ref[...].astype(jnp.float32)      # (H, 1) broadcast over lanes

    # Exact (erf) GELU, matching the PyTorch module.
    h = _gelu_exact(h)

    # layer2: W2 x H -> (D_out, tm); lane-dense result tile.
    y = lax.dot_general(
        w2_ref[...], h,
        dimension_numbers=(((1,), (0,)), ((), ())),
        preferred_element_type=jnp.float32,
    )
    y = y + b2_ref[...].astype(jnp.float32)      # (D_out, 1) broadcast

    o_ref[...] = y.astype(o_ref.dtype)


def _round_up(x, m):
    return ((x + m - 1) // m) * m


def nonlinear_forward(x, w1, b1, w2, b2, *, tm=None, tm_cap=4096):
    """NonLinear forward: gelu(x @ w1.T + b1) @ w2.T + b2.

    x: (..., D_in); w1: (H, D_in); b1: (H,); w2: (D_out, H); b2: (D_out,).
    The kernel computes a (D_out, M) slab with M on the lane axis; the axes
    are swapped back to (..., D_out) here in the wrapper.
    """
    orig_shape = x.shape
    d_in = orig_shape[-1]
    hidden = w1.shape[0]
    d_out = w2.shape[0]

    x2 = x.reshape(-1, d_in)
    m = x2.shape[0]

    if tm is None:
        if m <= 1024:
            # Single grid step; every block dim equals the full array dim, so
            # the (8,128) divisibility rule is satisfied for any m.
            tm = m
        else:
            # Large M: big tiles amortize the ~0.35us per-grid-step cost; the
            # step count is forced even so v7x's two TensorCores stay balanced
            # under dimension_semantics=("parallel",), and tm is a multiple of
            # 128 so the lane-dense (d_out, tm) output tile (and the (tm, d_in)
            # input tile) obey the (8,128) tiling rule.
            steps = max(2, pl.cdiv(m, tm_cap))
            if steps % 2:
                steps += 1
            tm = _round_up(pl.cdiv(m, steps), 128)
    else:
        tm = min(tm, m)
        if tm != m:
            tm = _round_up(tm, 128)
            if tm >= m:
                tm = m

    grid = (pl.cdiv(m, tm),)

    b1c = b1.reshape(hidden, 1)
    b2c = b2.reshape(d_out, 1)

    out_t = pl.pallas_call(
        nonlinear_kernel,
        out_shape=jax.ShapeDtypeStruct((d_out, m), x.dtype),
        grid_spec=pltpu.PrefetchScalarGridSpec(
            num_scalar_prefetch=0,
            grid=grid,
            in_specs=[
                pl.BlockSpec((tm, d_in), lambda i: (i, 0)),
                # Grid-invariant weights / biases: constant index_map, so the
                # same VMEM block is reused across all grid steps.
                pl.BlockSpec((hidden, d_in), lambda i: (0, 0)),
                pl.BlockSpec((hidden, 1), lambda i: (0, 0)),
                pl.BlockSpec((d_out, hidden), lambda i: (0, 0)),
                pl.BlockSpec((d_out, 1), lambda i: (0, 0)),
            ],
            out_specs=pl.BlockSpec((d_out, tm), lambda i: (0, i)),
        ),
        compiler_params=pltpu.CompilerParams(
            dimension_semantics=("parallel",),
            # Even at tm=4096 the per-step footprint is a few MiB (x tile
            # lane-padded 32->128 ~2 MiB, out tile ~0.25 MiB, double-buffered,
            # weights tiny), so 32 MiB leaves wide headroom on v5e/v6e/v7x.
            vmem_limit_bytes=32 * 1024 * 1024,
        ),
    )(x2, w1, b1c, w2, b2c)

    # Kernel emits (D_out, M); swap back to (..., D_out) here in the wrapper.
    out2 = out_t.T
    return out2.reshape(*orig_shape[:-1], d_out)


def _reference(x, w1, b1, w2, b2):
    h = x @ w1.T + b1
    h = 0.5 * h * (1.0 + lax.erf(h * _INV_SQRT2))
    return h @ w2.T + b2


if __name__ == "__main__":
    # NonLinear(input=32, output_size=16, hidden=64); x: (batch=2, seq=8, 32)
    d_in, hidden, d_out = 32, 64, 16
    batch, seq = 2, 8

    key = jax.random.PRNGKey(0)
    kx, kw1, kb1, kw2, kb2, kx2 = jax.random.split(key, 6)

    x = jax.random.normal(kx, (batch, seq, d_in), dtype=jnp.float32)

    # Deterministic parameter init (Kaiming-uniform-ish bounds like nn.Linear).
    bound1 = 1.0 / math.sqrt(d_in)
    w1 = jax.random.uniform(kw1, (hidden, d_in), jnp.float32, -bound1, bound1)
    b1 = jax.random.uniform(kb1, (hidden,), jnp.float32, -bound1, bound1)
    bound2 = 1.0 / math.sqrt(hidden)
    w2 = jax.random.uniform(kw2, (d_out, hidden), jnp.float32, -bound2, bound2)
    b2 = jax.random.uniform(kb2, (d_out,), jnp.float32, -bound2, bound2)

    # Small case: single grid step (tm == M == 16).
    out = nonlinear_forward(x, w1, b1, w2, b2)
    jax.block_until_ready(out)
    ref = _reference(x, w1, b1, w2, b2)
    assert out.shape == (batch, seq, d_out)
    assert jnp.allclose(out, ref, atol=1e-5, rtol=1e-5)

    # Larger-M case: M = 1200 -> 2 balanced grid steps (tm = 640), lane-dense
    # (16, 640) output tiles, masked tail handled by Pallas on the last step.
    xb = jax.random.normal(kx2, (4, 300, d_in), dtype=jnp.float32)
    outb = nonlinear_forward(xb, w1, b1, w2, b2)
    jax.block_until_ready(outb)
    refb = _reference(xb, w1, b1, w2, b2)
    assert outb.shape == (4, 300, d_out)
    assert jnp.allclose(outb, refb, atol=1e-5, rtol=1e-5)

    print("KERNEL_OK")
</pallas_src>

<mosaic_0001>
module attributes {stable_mosaic.version = 11 : i64} {
  func.func @nonlinear_kernel(%arg0: i32, %arg1: memref<16x32xf32, #tpu.memory_space<vmem>>, %arg2: memref<64x32xf32, #tpu.memory_space<vmem>>, %arg3: memref<64x1xf32, #tpu.memory_space<vmem>>, %arg4: memref<16x64xf32, #tpu.memory_space<vmem>>, %arg5: memref<16x1xf32, #tpu.memory_space<vmem>>, %arg6: memref<16x16xf32, #tpu.memory_space<vmem>>) attributes {dimension_semantics = [#tpu.dimension_semantics<parallel>], iteration_bounds = array<i64: 1>, scalar_prefetch = 0 : i64, scratch_operands = 0 : i64, tpu.core_type = #tpu.core_type<tc>, window_params = [{transform_indices = @transform_0, window_bounds = array<i64: 16, 32>}, {pipeline_mode = #tpu.pipeline_mode<synchronous>, transform_indices = @transform_1, window_bounds = array<i64: 64, 32>}, {pipeline_mode = #tpu.pipeline_mode<synchronous>, transform_indices = @transform_2, window_bounds = array<i64: 64, 1>}, {pipeline_mode = #tpu.pipeline_mode<synchronous>, transform_indices = @transform_3, window_bounds = array<i64: 16, 64>}, {pipeline_mode = #tpu.pipeline_mode<synchronous>, transform_indices = @transform_4, window_bounds = array<i64: 16, 1>}, {transform_indices = @transform_5, window_bounds = array<i64: 16, 16>}]} {
    %c0 = arith.constant 0 : index
    %c0_0 = arith.constant 0 : index
    %0 = vector.load %arg1[%c0, %c0_0] : memref<16x32xf32, #tpu.memory_space<vmem>>, vector<16x32xf32>
    %c0_1 = arith.constant 0 : index
    %c0_2 = arith.constant 0 : index
    %1 = vector.load %arg2[%c0_1, %c0_2] : memref<64x32xf32, #tpu.memory_space<vmem>>, vector<64x32xf32>
    %cst = arith.constant dense<0.000000e+00> : vector<64x16xf32>
    %2 = tpu.matmul %1, %0, %cst {dimension_numbers = #tpu.dot_dimension_numbers<[1], [1], [0], [0], [0, 0, 1, 0], [], []>} : vector<64x32xf32>, vector<16x32xf32>, vector<64x16xf32> -> vector<64x16xf32>
    %c0_3 = arith.constant 0 : index
    %c0_4 = arith.constant 0 : index
    %3 = vector.load %arg3[%c0_3, %c0_4] : memref<64x1xf32, #tpu.memory_space<vmem>>, vector<64x1xf32>
    %4 = vector.broadcast %3 : vector<64x1xf32> to vector<64x16xf32>
    %5 = arith.addf %2, %4 : vector<64x16xf32>
    %cst_5 = arith.constant 5.000000e-01 : f32
    %6 = vector.broadcast %cst_5 : f32 to vector<64x16xf32>
    %7 = arith.mulf %6, %5 : vector<64x16xf32>
    %cst_6 = arith.constant 0.707106769 : f32
    %8 = vector.broadcast %cst_6 : f32 to vector<64x16xf32>
    %9 = arith.mulf %5, %8 : vector<64x16xf32>
    %10 = math.erf %9 : vector<64x16xf32>
    %cst_7 = arith.constant 1.000000e+00 : f32
    %11 = vector.broadcast %cst_7 : f32 to vector<64x16xf32>
    %12 = arith.addf %11, %10 : vector<64x16xf32>
    %13 = arith.mulf %7, %12 : vector<64x16xf32>
    %c0_8 = arith.constant 0 : index
    %c0_9 = arith.constant 0 : index
    %14 = vector.load %arg4[%c0_8, %c0_9] : memref<16x64xf32, #tpu.memory_space<vmem>>, vector<16x64xf32>
    %cst_10 = arith.constant dense<0.000000e+00> : vector<16x16xf32>
    %15 = tpu.matmul %14, %13, %cst_10 {dimension_numbers = #tpu.dot_dimension_numbers<[1], [0], [0], [1], [0, 0, 1, 1], [], []>} : vector<16x64xf32>, vector<64x16xf32>, vector<16x16xf32> -> vector<16x16xf32>
    %c0_11 = arith.constant 0 : index
    %c0_12 = arith.constant 0 : index
    %16 = vector.load %arg5[%c0_11, %c0_12] : memref<16x1xf32, #tpu.memory_space<vmem>>, vector<16x1xf32>
    %17 = vector.broadcast %16 : vector<16x1xf32> to vector<16x16xf32>
    %18 = arith.addf %15, %17 : vector<16x16xf32>
    %c0_13 = arith.constant 0 : index
    %c0_14 = arith.constant 0 : index
    %19 = vector.load %arg6[%c0_13, %c0_14] : memref<16x16xf32, #tpu.memory_space<vmem>>, vector<16x16xf32>
    tpu.vector_store %arg6[%c0_13, %c0_14], %18 {strides = array<i32>} : memref<16x16xf32, #tpu.memory_space<vmem>>, vector<16x16xf32>,
    return
  }
  func.func @transform_0(%arg0: i32) -> (i32, i32) {
    %c0_i32 = arith.constant 0 : i32
    %c0_i32_0 = arith.constant 0 : i32
    return %arg0, %c0_i32 : i32, i32
  }
  func.func @transform_1(%arg0: i32) -> (i32, i32) {
    %c0_i32 = arith.constant 0 : i32
    %c0_i32_0 = arith.constant 0 : i32
    %c0_i32_1 = arith.constant 0 : i32
    return %c0_i32, %c0_i32_0 : i32, i32
  }
  func.func @transform_2(%arg0: i32) -> (i32, i32) {
    %c0_i32 = arith.constant 0 : i32
    %c0_i32_0 = arith.constant 0 : i32
    %c0_i32_1 = arith.constant 0 : i32
    return %c0_i32, %c0_i32_0 : i32, i32
  }
  func.func @transform_3(%arg0: i32) -> (i32, i32) {
    %c0_i32 = arith.constant 0 : i32
    %c0_i32_0 = arith.constant 0 : i32
    %c0_i32_1 = arith.constant 0 : i32
    return %c0_i32, %c0_i32_0 : i32, i32
  }
  func.func @transform_4(%arg0: i32) -> (i32, i32) {
    %c0_i32 = arith.constant 0 : i32
    %c0_i32_0 = arith.constant 0 : i32
    %c0_i32_1 = arith.constant 0 : i32
    return %c0_i32, %c0_i32_0 : i32, i32
  }
  func.func @transform_5(%arg0: i32) -> (i32, i32) {
    %c0_i32 = arith.constant 0 : i32
    %c0_i32_0 = arith.constant 0 : i32
    return %c0_i32, %arg0 : i32, i32
  }
}

</mosaic_0001>

<bundles_post_ra>
// kernel: tpu_custom_call.1
= control target key start
LH: loop header
LB: loop body
LE: loop exit
PB: predicated region body
PF: predicated region fallthrough
CT: control target
= control target key end

     0   :  { %vm79_vm0 = vcmask 261120   ;;  %v641_v3 = vmov 0   ;;  %s1042_s0 = inlined_call_operand.vmem [shape: f32[16,32], index: 0, kind: input, shape index: {}]   ;;  %s1043_s1 = inlined_call_operand.vmem [shape: f32[64,32], index: 1, kind: input, shape index: {}]   ;;  %s1044_s2 = inlined_call_operand.vmem [shape: f32[64,1], index: 2, kind: input, shape index: {}]   ;;  %s1045_s3 = inlined_call_operand.vmem [shape: f32[16,64], index: 3, kind: input, shape index: {}]   ;;  %s1046_s4 = inlined_call_operand.vmem [shape: f32[16,1], index: 4, kind: input, shape index: {}]   ;;  %s1047_s5 = inlined_call_operand.hbm [shape: f32[16,16], index: 5, kind: output, shape index: {}]  }
   0x1   :  { %v22_v0 = vld [vmem:[%s1042_s0 + $0x8] sm:$0xff]  ;;  %v38_v2 = vld [vmem:[%s1044_s2 + $0x38] sm:$0xff]  ;;  %597 = vset.pattern.permute.xlu1 %v641_v3  ;;  %v21_v4 = vld [vmem:[%s1042_s0] sm:$0xff]  ;;  %596 = vset.pattern.permute.xlu0 %v641_v3 }
   0x2   :  { %v36_v1 = vld [vmem:[%s1044_s2 + $0x28] sm:$0xff]  ;;  %568 = vmatpush.xpose.msk.msra.mxu0 %vm79_vm0, %v22_v0  ;;  %588 = vmatpush.xpose.msk.msra.mxu2 %vm79_vm0, %v22_v0  ;;  %v23_v5 = vld [vmem:[%s1043_s1] sm:$0xff]  ;;  %v26_v6 = vld [vmem:[%s1043_s1 + $0x18] sm:$0xff] }
   0x3   :  { %589 = vmatpush.xpose.msk.msra.mxu3 %vm79_vm0, %v22_v0  ;;  %66 = vperm.xlu1 %597, %v36_v1   ;;  %v34_v7 = vld [vmem:[%s1044_s2 + $0x18] sm:$0xff]  ;;  %v29_v8 = vld [vmem:[%s1043_s1 + $0x30] sm:$0xff] }
   0x4   :  { %76 = vperm.xlu0 %596, %v38_v2   ;;  %598 = vset.pattern.permute.xlu2 %v641_v3 }
   0x5   :  { %56 = vperm.xlu2 %598, %v34_v7  }
   0x6   :  { %569 = vmatpush.xpose.msk.msra.mxu0 %vm79_vm0, %v21_v4  ;;  %590 = vmatpush.xpose.msk.msra.mxu2 %vm79_vm0, %v21_v4 }
   0x7   :  { %591 = vmatpush.xpose.msk.msra.mxu3 %vm79_vm0, %v21_v4 }
   0x8   :  { %10 = vsyncpa [#allocation3], 0  ;;  %v35_v9 = vld [vmem:[%s1044_s2 + $0x20] sm:$0xff]  ;;  %v37_v10 = vld [vmem:[%s1044_s2 + $0x30] sm:$0xff]  ;;  %s642_s7 = smov [#allocation2]   ;;  %s556_s11 = sshll.u32 %s1047_s5, 4  ;;  %s557_s11 = int_to_ptr.hbm [resolvable:$true] %s556_s11 }
   0x9   :  { %570 = vmatmul.msk.f32.vlgmr.msra.gmra.mxu0 %vm79_vm0, %v23_v5  ;;  %573 = vmatmul.msk.f32.vlgmr.msra.gmra.mxu2 %vm79_vm0, %v26_v6  ;;  %v33_v11 = vld [vmem:[%s1044_s2 + $0x10] sm:$0xff]  ;;  %v24_v12 = vld [vmem:[%s1043_s1 + $0x8] sm:$0xff]  ;;  %v27_v13 = vld [vmem:[%s1043_s1 + $0x20] sm:$0xff]  ;;  %s554_s8 = sshll.u32 %s642_s7, 4  ;;  %s643_s12 = smov 128   ;;  %s555_s8 = int_to_ptr.vmem [resolvable:$true] %s554_s8 }
   0xa   :  { %576 = vmatmul.msk.f32.vlgmr.msra.gmra.mxu3 %vm79_vm0, %v29_v8  ;;  %v30_v14 = vld [vmem:[%s1043_s1 + $0x38] sm:$0xff]  ;;  %v31_v15 = vld [vmem:[%s1044_s2] sm:$0xff]  ;;  %v32_v16 = vld [vmem:[%s1044_s2 + $0x8] sm:$0xff] }
   0xb   :  { %61 = vperm.xlu1 %597, %v35_v9   ;;  %v505_v17 = vld [vmem:[%s1046_s4] sm:$0xff]  ;;  %v25_v18 = vld [vmem:[%s1043_s1 + $0x10] sm:$0xff]  ;;  %v28_v19 = vld [vmem:[%s1043_s1 + $0x28] sm:$0xff] }
   0xc   :  { %71 = vperm.xlu0 %596, %v37_v10   ;;  %v506_v20 = vld [vmem:[%s1046_s4 + $0x8] sm:$0xff] }
   0xd   :  { %51 = vperm.xlu2 %598, %v33_v11  }
  0x11   :  { %571 = vmatmul.msk.f32.gmra.mxu0 %vm79_vm0, %v24_v12  ;;  %574 = vmatmul.msk.f32.gmra.mxu2 %vm79_vm0, %v27_v13 }
  0x12   :  { %577 = vmatmul.msk.f32.gmra.mxu3 %vm79_vm0, %v30_v14 }
  0x13   :  { %41 = vperm.xlu1 %597, %v31_v15  }
  0x14   :  { %46 = vperm.xlu0 %596, %v32_v16  }
  0x15   :  { %509 = vperm.xlu2 %598, %v505_v17  }
  0x19   :  { %572 = vmatmul.msk.f32.gmra.mxu0 %vm79_vm0, %v25_v18  ;;  %575 = vmatmul.msk.f32.gmra.mxu2 %vm79_vm0, %v28_v19 }
  0x1c   :  { %514 = vperm.xlu0 %596, %v506_v20  }
  0x5f   :  { %v57_v28 = vpop.permute.xlu2 %56 }
  0x67   :  { %v52_v54 = vpop.permute.xlu2 %51 }
  0x75   :  { %v749_v21 = vpop.permute.xlu1 %66 }
  0x76   :  { %v77_v22 = vpop.permute.xlu0 %76 }
  0x7d   :  { %v62_v23 = vpop.permute.xlu1 %61 }
  0x7e   :  { %v72_v26 = vpop.permute.xlu0 %71 }
  0x85   :  { %v42_v24 = vpop.permute.xlu1 %41 }
  0x86   :  { %v127_v25 = vpop.f32.mrf.mxu0  ;;  %v47_v38 = vpop.permute.xlu0 %46 }
  0x87   :  { %v751_v27 = vadd.f32 %v127_v25, %v42_v24 }
  0x89   :  { %v754_v30 = vmul.f32 0.70710677, %v751_v27 }
  0x8b   :  { %v167_v37 = vmul.f32 %v754_v30, %v754_v30 }
  0x8c   :  { %v136_v29 = vpop.f32.mrf.mxu2 }
  0x8d   :  { %v756_v31 = vadd.f32 %v136_v29, %v57_v28  ;;  %v145_v32 = vpop.f32.mrf.mxu3  ;;  %v775_v45 = vmin.f32 %v167_v37, 16.0 }
  0x8e   :  { %v146_v33 = vadd.f32 %v145_v32, %v72_v26  ;;  %v130_v34 = vpop.f32.mrf.mxu0 }
  0x8f   :  { %v759_v35 = vmul.f32 0.70710677, %v756_v31  ;;  %v769_v41 = vadd.f32 %v130_v34, %v47_v38  ;;  %v169_v59 = vmul.f32 2.1237322e-06, %v775_v45 }
  0x90   :  { %v761_v36 = vmul.f32 0.70710677, %v146_v33  ;;  %v830_v34 = vmul.f32 0.5, %v146_v33 }
  0x91   :  { %v287_v39 = vmul.f32 %v759_v35, %v759_v35  ;;  %v782_v50 = vmul.f32 0.70710677, %v769_v41  ;;  %v170_v6 = vadd.f32 0.00028619796, %v169_v59 }
  0x92   :  { %v407_v40 = vmul.f32 %v761_v36, %v761_v36 }
  0x93   :  { %v771_v42 = vmin.f32 %v287_v39, 16.0  ;;  %v207_v62 = vmul.f32 %v782_v50, %v782_v50  ;;  %v171_v20 = vmul.f32 %v170_v6, %v775_v45 }
  0x94   :  { %v773_v43 = vmin.f32 %v407_v40, 16.0  ;;  %v139_v44 = vpop.f32.mrf.mxu2 }
  0x95   :  { %v289_v46 = vmul.f32 2.1237322e-06, %v771_v42  ;;  %v778_v47 = vadd.f32 %v139_v44, %v62_v23  ;;  %v148_v48 = vpop.f32.mrf.mxu3  ;;  %v814_v10 = vmin.f32 %v207_v62, 16.0  ;;  %v833_v40 = vadd.f32 0.0036580483, %v171_v20 }
  0x96   :  { %v409_v49 = vmul.f32 2.1237322e-06, %v773_v43  ;;  %v784_v51 = vadd.f32 %v148_v48, %v77_v22  ;;  %v133_v52 = vpop.f32.mrf.mxu0  ;;  %v420_v16 = vmul.f32 3.8918573e-05, %v773_v43 }
  0x97   :  { %v290_v53 = vadd.f32 0.00028619796, %v289_v46  ;;  %v787_v56 = vmul.f32 0.70710677, %v778_v47  ;;  %v792_v58 = vadd.f32 %v133_v52, %v52_v54  ;;  %v209_v24 = vmul.f32 2.1237322e-06, %v814_v10 }
  0x98   :  { %v410_v55 = vadd.f32 0.00028619796, %v409_v49  ;;  %v790_v57 = vmul.f32 0.70710677, %v784_v51  ;;  %v421_v32 = vadd.f32 0.001143296, %v420_v16 }
  0x99   :  { %v291_v60 = vmul.f32 %v290_v53, %v771_v42  ;;  %v327_v63 = vmul.f32 %v787_v56, %v787_v56  ;;  %v804_v2 = vmul.f32 0.70710677, %v792_v58  ;;  %v300_v46 = vmul.f32 3.8918573e-05, %v771_v42 }
  0x9a   :  { %v411_v61 = vmul.f32 %v410_v55, %v773_v43  ;;  %v447_v0 = vmul.f32 %v790_v57, %v790_v57  ;;  %v210_v48 = vadd.f32 0.00028619796, %v209_v24  ;;  %v422_v59 = vmul.f32 %v421_v32, %v773_v43 }
  0x9b   :  { %v292_v1 = vadd.f32 0.0036580483, %v291_v60  ;;  %v806_v4 = vmin.f32 %v327_v63, 16.0  ;;  %v247_v8 = vmul.f32 %v804_v2, %v804_v2  ;;  %v847_v63 = vmul.f32 0.5, %v778_v47 }
  0x9c   :  { %v412_v3 = vadd.f32 0.0036580483, %v411_v61  ;;  %v808_v5 = vmin.f32 %v447_v0, 16.0  ;;  %v142_v13 = vpop.f32.mrf.mxu2  ;;  %v211_v6 = vmul.f32 %v210_v48, %v814_v10 }
  0x9d   :  { %v293_v7 = vmul.f32 %v292_v1, %v771_v42  ;;  %v329_v11 = vmul.f32 2.1237322e-06, %v806_v4  ;;  %v818_v15 = vmin.f32 %v247_v8, 16.0  ;;  %v824_v23 = vadd.f32 %v142_v13, %v749_v21 }
  0x9e   :  { %v413_v9 = vmul.f32 %v412_v3, %v773_v43  ;;  %v449_v12 = vmul.f32 2.1237322e-06, %v808_v5  ;;  %v460_v33 = vmul.f32 3.8918573e-05, %v808_v5  ;;  %v853_v3 = vmul.f32 0.5, %v784_v51 }
  0x9f   :  { %v294_v14 = vadd.f32 0.05243302, %v293_v7  ;;  %v330_v18 = vadd.f32 0.00028619796, %v329_v11  ;;  %v249_v22 = vmul.f32 2.1237322e-06, %v818_v15 }
  0xa0   :  { %v414_v17 = vadd.f32 0.05243302, %v413_v9  ;;  %v450_v19 = vadd.f32 0.00028619796, %v449_v12  ;;  %v837_v44 = vmul.f32 0.70710677, %v824_v23 }
  0xa1   :  { %v331_v25 = vmul.f32 %v330_v18, %v806_v4  ;;  %v295_v28 = vmul.f32 %v294_v14, %v771_v42  ;;  %v250_v29 = vadd.f32 0.00028619796, %v249_v22  ;;  %v461_v9 = vadd.f32 0.001143296, %v460_v33 }
  0xa2   :  { %v451_v26 = vmul.f32 %v450_v19, %v808_v5  ;;  %v415_v37 = vmul.f32 %v414_v17, %v773_v43  ;;  %v367_v55 = vmul.f32 %v837_v44, %v837_v44  ;;  %v423_v13 = vadd.f32 0.014752088, %v422_v59 }
  0xa3   :  { %v332_v38 = vadd.f32 0.0036580483, %v331_v25  ;;  %v251_v21 = vmul.f32 %v250_v29, %v818_v15  ;;  %v296_v53 = vadd.f32 0.18741608, %v295_v28  ;;  %v462_v17 = vmul.f32 %v461_v9, %v808_v5 }
  0xa4   :  { %v452_v39 = vadd.f32 0.0036580483, %v451_v26  ;;  %v416_v60 = vadd.f32 0.18741608, %v415_v37  ;;  %v850_v1 = vmin.f32 %v367_v55, 16.0  ;;  %v424_v20 = vmul.f32 %v423_v13, %v773_v43 }
  0xa5   :  { %v333_v49 = vmul.f32 %v332_v38, %v806_v4  ;;  %v252_v54 = vadd.f32 0.0036580483, %v251_v21  ;;  %v297_v11 = vmul.f32 %v296_v53, %v771_v42  ;;  %v340_v22 = vmul.f32 3.8918573e-05, %v806_v4 }
  0xa6   :  { %v453_v52 = vmul.f32 %v452_v39, %v808_v5  ;;  %v369_v47 = vmul.f32 2.1237322e-06, %v850_v1  ;;  %v417_v14 = vmul.f32 %v416_v60, %v773_v43  ;;  %v380_v51 = vmul.f32 3.8918573e-05, %v850_v1 }
  0xa7   :  { %v334_v61 = vadd.f32 0.05243302, %v333_v49  ;;  %v253_v0 = vmul.f32 %v252_v54, %v818_v15  ;;  %v212_v24 = vadd.f32 0.0036580483, %v211_v6  ;;  %v463_v26 = vadd.f32 0.014752088, %v462_v17 }
  0xa8   :  { %v454_v62 = vadd.f32 0.05243302, %v453_v52  ;;  %v370_v19 = vadd.f32 0.00028619796, %v369_v47  ;;  %v381_v28 = vadd.f32 0.001143296, %v380_v51 }
  0xa9   :  { %v335_v7 = vmul.f32 %v334_v61, %v806_v4  ;;  %v254_v12 = vadd.f32 0.05243302, %v253_v0  ;;  %v425_v37 = vadd.f32 0.112945676, %v424_v20  ;;  %v341_v38 = vadd.f32 0.001143296, %v340_v22 }
  0xaa   :  { %v455_v8 = vmul.f32 %v454_v62, %v808_v5  ;;  %v371_v32 = vmul.f32 %v370_v19, %v850_v1  ;;  %v298_v39 = vadd.f32 1.1283791, %v297_v11  ;;  %v418_v21 = vadd.f32 1.1283791, %v417_v14 }
  0xab   :  { %v336_v16 = vadd.f32 0.18741608, %v335_v7  ;;  %v255_v25 = vmul.f32 %v254_v12, %v818_v15  ;;  %v464_v48 = vmul.f32 %v463_v26, %v808_v5  ;;  %v382_v49 = vmul.f32 %v381_v28, %v850_v1 }
  0xac   :  { %v456_v18 = vadd.f32 0.18741608, %v455_v8  ;;  %v372_v33 = vadd.f32 0.0036580483, %v371_v32  ;;  %v426_v53 = vmul.f32 %v425_v37, %v773_v43  ;;  %v342_v54 = vmul.f32 %v341_v38, %v806_v4 }
  0xad   :  { %v337_v29 = vmul.f32 %v336_v16, %v806_v4  ;;  %v213_v55 = vmul.f32 %v212_v24, %v814_v10  ;;  %v256_v59 = vadd.f32 0.18741608, %v255_v25  ;;  %v465_v60 = vadd.f32 0.112945676, %v464_v48 }
  0xae   :  { %v457_v52 = vmul.f32 %v456_v18, %v808_v5  ;;  %v383_v61 = vadd.f32 0.014752088, %v382_v49  ;;  %v373_v0 = vmul.f32 %v372_v33, %v850_v1  ;;  %v427_v6 = vadd.f32 0.4994258, %v426_v53 }
  0xaf   :  { %v338_v62 = vadd.f32 1.1283791, %v337_v29  ;;  %v343_v7 = vadd.f32 0.014752088, %v342_v54  ;;  %v466_v8 = vmul.f32 %v465_v60, %v808_v5  ;;  %v301_v11 = vadd.f32 0.001143296, %v300_v46 }
  0xb0   :  { %v384_v9 = vmul.f32 %v383_v61, %v850_v1  ;;  %v260_v12 = vmul.f32 3.8918573e-05, %v818_v15  ;;  %v458_v47 = vadd.f32 1.1283791, %v457_v52  ;;  %v374_v13 = vadd.f32 0.05243302, %v373_v0 }
  0xb1   :  { %v428_v14 = vmul.f32 %v427_v6, %v773_v43  ;;  %v344_v16 = vmul.f32 %v343_v7, %v806_v4  ;;  %v467_v17 = vadd.f32 0.4994258, %v466_v8  ;;  %v302_v18 = vmul.f32 %v301_v11, %v771_v42 }
  0xb2   :  { %v385_v51 = vadd.f32 0.112945676, %v384_v9  ;;  %v261_v19 = vadd.f32 0.001143296, %v260_v12  ;;  %v257_v20 = vmul.f32 %v256_v59, %v818_v15  ;;  %v375_v22 = vmul.f32 %v374_v13, %v850_v1 }
  0xb3   :  { %v883_v24 = vadd.f32 1.0, %v428_v14  ;;  %v345_v46 = vadd.f32 0.112945676, %v344_v16  ;;  %v468_v25 = vmul.f32 %v467_v17, %v808_v5  ;;  %v303_v28 = vadd.f32 0.014752088, %v302_v18 }
  0xb4   :  { %v386_v26 = vmul.f32 %v385_v51, %v850_v1  ;;  %v262_v43 = vmul.f32 %v261_v19, %v818_v15  ;;  %v888_v29 = vadd.f32 0.05243302, %v213_v55  ;;  %v891_v32 = vmul.f32 0.5, %v824_v23 }
  0xb5   :  { %v376_v37 = vadd.f32 0.18741608, %v375_v22  ;;  %599 = vrcp.f32 %v883_v24  ;;  %v895_v38 = vmul.f32 %v298_v39, %v759_v35  ;;  %v897_v48 = vadd.f32 1.0, %v468_v25 }
  0xb6   :  { %v387_v49 = vadd.f32 0.4994258, %v386_v26  ;;  %v346_v5 = vmul.f32 %v345_v46, %v806_v4  ;;  %v901_v52 = vmul.f32 %v418_v21, %v761_v36  ;;  %v904_v33 = vmul.f32 %v338_v62, %v787_v56 }
  0xb7   :  { %v304_v23 = vmul.f32 %v303_v28, %v771_v42  ;;  %v263_v53 = vadd.f32 0.014752088, %v262_v43  ;;  %v908_v54 = vmul.f32 %v458_v47, %v790_v57  ;;  %v910_v55 = vadd.f32 1.1283791, %v257_v20 }
  0xb8   :  { %601 = vrcp.f32 %v897_v48  ;;  %v439_v35 = vand.u32 2147483647, %v883_v24  ;;  %v377_v39 = vmul.f32 %v376_v37, %v850_v1  ;;  %v441_v36 = vand.u32 2147483648, %v883_v24 }
  0xb9   :  { %v388_v21 = vmul.f32 %v387_v49, %v850_v1  ;;  %v347_v56 = vadd.f32 0.4994258, %v346_v5  ;;  %vm435_vm1 = vweird.f32 %v883_v24  ;;  %v305_v59 = vadd.f32 0.112945676, %v304_v23 }
  0xba   :  { %v264_v60 = vmul.f32 %v263_v53, %v818_v15  ;;  %v220_v57 = vmul.f32 3.8918573e-05, %v814_v10  ;;  %v479_v62 = vand.u32 2147483647, %v897_v48  ;;  %v481_v0 = vand.u32 2147483648, %v897_v48 }
  0xbb   :  { %v600_v61 = vpop.eup %599  ;;  %v922_v6 = vadd.f32 1.0, %v388_v21  ;;  %v348_v7 = vmul.f32 %v347_v56, %v806_v4  ;;  %vm926_vm2 = vcmp.eq.f32.partialorder %v439_v35, 8.507059e+37  ;;  %v306_v9 = vmul.f32 %v305_v59, %v771_v42 }
  0xbc   :  { %v431_v8 = vmul.f32 %v600_v61, %v883_v24  ;;  %v265_v11 = vadd.f32 0.112945676, %v264_v60  ;;  %v378_v12 = vadd.f32 1.1283791, %v377_v39  ;;  %vm475_vm3 = vweird.f32 %v897_v48 }
  0xbd   :  { %v442_v47 = vor.u32 1.1754944e-38, %v441_v36  ;;  %603 = vrcp.f32 %v922_v6  ;;  %v933_v16 = vadd.f32 1.0, %v348_v7  ;;  %v307_v4 = vadd.f32 0.4994258, %v306_v9 }
  0xbe   :  { %v602_v13 = vpop.eup %601  ;;  %v432_v14 = vsub.f32 1.0, %v431_v8  ;;  %v266_v17 = vmul.f32 %v265_v11, %v818_v15  ;;  %vm937_vm4 = vcmp.eq.f32.partialorder %v479_v62, 8.507059e+37  ;;  %v482_v19 = vor.u32 1.1754944e-38, %v481_v0 }
  0xbf   :  { %v471_v51 = vmul.f32 %v602_v13, %v897_v48  ;;  %v221_v20 = vadd.f32 0.001143296, %v220_v57  ;;  %vm436_vm5 = vweird.f32 %v600_v61  ;;  %v399_v46 = vand.u32 2147483647, %v922_v6 }
  0xc0   :  { %v433_v22 = vmul.f32 %v600_v61, %v432_v14  ;;  %605 = vrcp.f32 %v933_v16  ;;  %v401_v26 = vand.u32 2147483648, %v922_v6  ;;  %v308_v28 = vmul.f32 %v307_v4, %v771_v42  ;;  %vm437_vm7 = vmor %vm435_vm1, %vm436_vm5 }
  0xc1   :  { %v472_v25 = vsub.f32 1.0, %v471_v51  ;;  %v267_v43 = vadd.f32 0.4994258, %v266_v17  ;;  %v379_v37 = vmul.f32 %v378_v12, %v837_v44  ;;  %vm476_vm6 = vweird.f32 %v602_v13 }
  0xc2   :  { %v434_v49 = vadd.f32 %v600_v61, %v433_v22  ;;  %v359_v5 = vand.u32 2147483647, %v933_v16  ;;  %v949_v35 = vadd.f32 1.0, %v308_v28  ;;  %v222_v36 = vmul.f32 %v221_v20, %v814_v10  ;;  %vm477_vm10 = vmor %vm475_vm3, %vm476_vm6 }
  0xc3   :  { %v604_v23 = vpop.eup %603  ;;  %v473_v53 = vmul.f32 %v602_v13, %v472_v25  ;;  %v268_v39 = vmul.f32 %v267_v43, %v818_v15  ;;  %vm395_vm8 = vweird.f32 %v922_v6  ;;  %vm955_vm9 = vcmp.eq.f32.partialorder %v399_v46, 8.507059e+37 }
  0xc4   :  { %v438_v21 = vsel %vm437_vm7, %v600_v61, %v434_v49  ;;  %v391_v42 = vmul.f32 %v604_v23, %v922_v6  ;;  %v402_v59 = vor.u32 1.1754944e-38, %v401_v26  ;;  %607 = vrcp.f32 %v949_v35 }
  0xc5   :  { %v474_v56 = vadd.f32 %v602_v13, %v473_v53  ;;  %v443_v24 = vsel %vm926_vm2, %v442_v47, %v438_v21  ;;  %vm355_vm11 = vweird.f32 %v933_v16  ;;  %v361_v61 = vand.u32 2147483648, %v933_v16 }
  0xc6   :  { %v606_v60 = vpop.eup %605  ;;  %v444_v15 = vmul.f32 %v443_v24, %v901_v52  ;;  %v392_v57 = vsub.f32 1.0, %v391_v42  ;;  %vm969_vm12 = vcmp.eq.f32.partialorder %v359_v5, 8.507059e+37  ;;  %v973_v8 = vadd.f32 1.0, %v268_v39 }
  0xc7   :  { %v478_v62 = vsel %vm477_vm10, %v602_v13, %v474_v56  ;;  %v351_v0 = vmul.f32 %v606_v60, %v933_v16  ;;  %v223_v1 = vadd.f32 0.014752088, %v222_v36  ;;  %vm396_vm13 = vweird.f32 %v604_v23 }
  0xc8   :  { %v483_v48 = vsel %vm937_vm4, %v482_v19, %v478_v62  ;;  %v393_v9 = vmul.f32 %v604_v23, %v392_v57  ;;  %v319_v52 = vand.u32 2147483647, %v949_v35  ;;  %v584_v12 = vclamps-f32 %v444_v15, 1.0  ;;  %vm397_vm14 = vmor %vm395_vm8, %vm396_vm13 }
  0xc9   :  { %v484_v11 = vmul.f32 %v483_v48, %v908_v54  ;;  %v352_v47 = vsub.f32 1.0, %v351_v0  ;;  %609 = vrcp.f32 %v973_v8  ;;  %v362_v14 = vor.u32 1.1754944e-38, %v361_v61 }
  0xca   :  { %v394_v13 = vadd.f32 %v604_v23, %v393_v9  ;;  %v321_v4 = vand.u32 2147483648, %v949_v35  ;;  %v180_v17 = vmul.f32 3.8918573e-05, %v775_v45  ;;  %v608_v51 = vpop.eup %607  ;;  %vm356_vm15 = vweird.f32 %v606_v60 }
  0xcb   :  { %v585_v20 = vclamps-f32 %v484_v11, 1.0  ;;  %v353_v18 = vmul.f32 %v606_v60, %v352_v47  ;;  %v224_v19 = vmul.f32 %v223_v1, %v814_v10  ;;  %v311_v22 = vmul.f32 %v608_v51, %v949_v35  ;;  %vm357_vm2 = vmor %vm355_vm11, %vm356_vm15 }
  0xcc   :  { %v398_v54 = vsel %vm397_vm14, %v604_v23, %v394_v13  ;;  %vm315_vm0 = vweird.f32 %v949_v35  ;;  %vm987_vm1 = vcmp.eq.f32.partialorder %v319_v52, 8.507059e+37  ;;  %v493_v26 = vadd.f32 1.0, %v584_v12 }
  0xcd   :  { %v494_v25 = vadd.f32 1.0, %v585_v20  ;;  %v403_v28 = vsel %vm955_vm9, %v402_v59, %v398_v54  ;;  %v354_v6 = vadd.f32 %v606_v60, %v353_v18  ;;  %v312_v49 = vsub.f32 1.0, %v311_v22 }
  0xce   :  { %v404_v43 = vmul.f32 %v403_v28, %v379_v37  ;;  %v322_v5 = vor.u32 1.1754944e-38, %v321_v4  ;;  %v225_v23 = vadd.f32 0.112945676, %v224_v19  ;;  %vm316_vm3 = vweird.f32 %v608_v51 }
  0xcf   :  { %v610_v53 = vpop.eup %609  ;;  %v502_v39 = vmul.f32 %v494_v25, %v853_v3  ;;  %v358_v36 = vsel %vm357_vm2, %v606_v60, %v354_v6  ;;  %v181_v21 = vadd.f32 0.001143296, %v180_v17  ;;  %v313_v44 = vmul.f32 %v608_v51, %v312_v49  ;;  %vm317_vm4 = vmor %vm315_vm0, %vm316_vm3 }
  0xd0   :  { %v583_v42 = vclamps-f32 %v404_v43, 1.0  ;;  %v363_v56 = vsel %vm969_vm12, %v362_v14, %v358_v36  ;;  %v271_v24 = vmul.f32 %v610_v53, %v973_v8  ;;  %v501_v16 = vmul.f32 %v493_v26, %v830_v34 }
  0xd1   :  { %532 = vmatpush.msra.mxu1 %v502_v39  ;;  %v364_v37 = vmul.f32 %v363_v56, %v904_v33  ;;  %v226_v59 = vmul.f32 %v225_v23, %v814_v10  ;;  %v182_v15 = vmul.f32 %v181_v21, %v775_v45  ;;  %v314_v60 = vadd.f32 %v608_v51, %v313_v44 }
  0xd2   :  { %v492_v3 = vadd.f32 1.0, %v583_v42  ;;  %v272_v57 = vsub.f32 1.0, %v271_v24  ;;  %v279_v61 = vand.u32 2147483647, %v973_v8  ;;  %v281_v0 = vand.u32 2147483648, %v973_v8 }
  0xd3   :  { %533 = vmatpush.msra.mxu1 %v501_v16  ;;  %v582_v62 = vclamps-f32 %v364_v37, 1.0  ;;  %v227_v34 = vadd.f32 0.4994258, %v226_v59  ;;  %v183_v7 = vadd.f32 0.014752088, %v182_v15  ;;  %v318_v1 = vsel %vm317_vm4, %v608_v51, %v314_v60 }
  0xd4   :  { %v500_v33 = vmul.f32 %v492_v3, %v891_v32  ;;  %v273_v48 = vmul.f32 %v610_v53, %v272_v57  ;;  %vm276_vm5 = vweird.f32 %v610_v53  ;;  %v323_v52 = vsel %vm987_vm1, %v322_v5, %v318_v1 }
  0xd5   :  { %v491_v9 = vadd.f32 1.0, %v582_v62  ;;  %v228_v11 = vmul.f32 %v227_v34, %v814_v10  ;;  %v184_v12 = vmul.f32 %v183_v7, %v775_v45  ;;  %v215_v35 = vmul.f32 %v888_v29, %v814_v10 }
  0xd6   :  { %534 = vmatpush.msra.mxu1 %v500_v33  ;;  %v324_v47 = vmul.f32 %v323_v52, %v895_v38  ;;  %v274_v13 = vadd.f32 %v610_v53, %v273_v48  ;;  %vm275_vm6 = vweird.f32 %v973_v8  ;;  %v282_v14 = vor.u32 1.1754944e-38, %v281_v0 }
  0xd7   :  { %v499_v32 = vmul.f32 %v491_v9, %v847_v63  ;;  %vm277_vm7 = vmor %vm275_vm6, %vm276_vm5  ;;  %v229_v4 = vadd.f32 1.0, %v228_v11  ;;  %v185_v17 = vadd.f32 0.112945676, %v184_v12  ;;  %v259_v51 = vmul.f32 %v910_v55, %v804_v2 }
  0xd8   :  { %v581_v20 = vclamps-f32 %v324_v47, 1.0  ;;  %v278_v18 = vsel %vm277_vm7, %v610_v53, %v274_v13  ;;  %vm280_vm8 = vcmp.eq.f32.partialorder %v279_v61, 8.507059e+37  ;;  %v173_v29 = vmul.f32 %v833_v40, %v775_v45 }
  0xd9   :  { %535 = vmatpush.msra.mxu1 %v499_v32  ;;  %v283_v38 = vsel %vm280_vm8, %v282_v14, %v278_v18  ;;  %611 = vrcp.f32 %v229_v4  ;;  %v154_v8 = vmul.f32 0.5, %v756_v31  ;;  %v186_v54 = vmul.f32 %v185_v17, %v775_v45  ;;  %v510_v32 = vpop.permute.xlu2 %509 }
  0xda   :  { %v490_v19 = vadd.f32 1.0, %v581_v20  ;;  %v284_v63 = vmul.f32 %v283_v38, %v259_v51  ;;  %v216_v22 = vadd.f32 0.18741608, %v215_v35  ;;  %v174_v2 = vadd.f32 0.05243302, %v173_v29 }
  0xdb   :  { %v187_v26 = vadd.f32 0.4994258, %v186_v54  ;;  %v153_v55 = vmul.f32 0.5, %v792_v58  ;;  %v241_v39 = vand.u32 2147483648, %v229_v4  ;;  %v239_v58 = vand.u32 2147483647, %v229_v4 }
  0xdc   :  { %v498_v46 = vmul.f32 %v490_v19, %v154_v8  ;;  %v580_v25 = vclamps-f32 %v284_v63, 1.0  ;;  %v217_v43 = vmul.f32 %v216_v22, %v814_v10  ;;  %v175_v23 = vmul.f32 %v174_v2, %v775_v45 }
  0xdd   :  { %v188_v40 = vmul.f32 %v187_v26, %v775_v45  ;;  %vm235_vm10 = vweird.f32 %v229_v4  ;;  %v242_v44 = vor.u32 1.1754944e-38, %v241_v39  ;;  %vm240_vm12 = vcmp.eq.f32.partialorder %v239_v58, 8.507059e+37 }
  0xde   :  { %536 = vmatpush.msra.mxu1 %v498_v46  ;;  %v489_v28 = vadd.f32 1.0, %v580_v25  ;;  %v218_v36 = vadd.f32 1.1283791, %v217_v43  ;;  %v176_v42 = vadd.f32 0.18741608, %v175_v23  ;;  %v152_v7 = vmul.f32 0.5, %v769_v41 }
  0xdf   :  { %v612_v6 = vpop.eup %611  ;;  %v189_v5 = vadd.f32 1.0, %v188_v40  ;;  %v151_v35 = vmul.f32 0.5, %v751_v27  ;;  %v503_v41 = vld [vmem:[%s1045_s3] sm:$0xff]  ;;  %vm517_vm1 = vcmask 523264   ;;  %vm547_vm2 = vcmask 130048   ;;  %v515_v27 = vpop.permute.xlu0 %514 }
  0xe0   :  { %v497_v49 = vmul.f32 %v489_v28, %v153_v55  ;;  %v231_v31 = vmul.f32 %v612_v6, %v229_v4  ;;  %vm236_vm9 = vweird.f32 %v612_v6  ;;  %v219_v10 = vmul.f32 %v218_v36, %v782_v50 }
  0xe1   :  { %613 = vrcp.f32 %v189_v5  ;;  %vm237_vm11 = vmor %vm235_vm10, %vm236_vm9  ;;  %v177_v37 = vmul.f32 %v176_v42, %v775_v45  ;;  %v201_v61 = vand.u32 2147483648, %v189_v5  ;;  %v199_v34 = vand.u32 2147483647, %v189_v5 }
  0xe2   :  { %537 = vmatpush.msra.mxu1 %v497_v49  ;;  %v232_v53 = vsub.f32 1.0, %v231_v31  ;;  %vm195_vm14 = vweird.f32 %v189_v5 }
  0xe3   :  { %v178_v62 = vadd.f32 1.1283791, %v177_v37  ;;  %v202_v48 = vor.u32 1.1754944e-38, %v201_v61  ;;  %vm200_vm0 = vcmp.eq.f32.partialorder %v199_v34, 8.507059e+37 }
  0xe4   :  { %v233_v21 = vmul.f32 %v612_v6, %v232_v53 }
  0xe5   :  { %v179_v45 = vmul.f32 %v178_v62, %v754_v30  ;;  %v504_v30 = vld [vmem:[%s1045_s3 + $0x8] sm:$0xff]  ;;  %s644_s3 = smov 8  }
  0xe6   :  { %v234_v56 = vadd.f32 %v612_v6, %v233_v21 }
  0xe7   :  { %v614_v24 = vpop.eup %613 }
  0xe8   :  { %v238_v16 = vsel %vm237_vm11, %v612_v6, %v234_v56  ;;  %v191_v15 = vmul.f32 %v614_v24, %v189_v5  ;;  %vm196_vm13 = vweird.f32 %v614_v24 }
  0xe9   :  { %v243_v59 = vsel %vm240_vm12, %v242_v44, %v238_v16  ;;  %vm197_vm15 = vmor %vm195_vm14, %vm196_vm13 }
  0xea   :  { %v244_v3 = vmul.f32 %v243_v59, %v219_v10  ;;  %v192_v60 = vsub.f32 1.0, %v191_v15 }
  0xec   :  { %v579_v57 = vclamps-f32 %v244_v3, 1.0  ;;  %v193_v0 = vmul.f32 %v614_v24, %v192_v60 }
  0xee   :  { %v488_v33 = vadd.f32 1.0, %v579_v57  ;;  %v194_v1 = vadd.f32 %v614_v24, %v193_v0 }
  0xf0   :  { %v496_v50 = vmul.f32 %v488_v33, %v152_v7  ;;  %v198_v9 = vsel %vm197_vm15, %v614_v24, %v194_v1 }
  0xf1   :  { %v203_v52 = vsel %vm200_vm0, %v202_v48, %v198_v9 }
  0xf2   :  { %538 = vmatpush.msra.mxu1 %v496_v50  ;;  %v204_v11 = vmul.f32 %v203_v52, %v179_v45 }
  0xf4   :  { %v578_v12 = vclamps-f32 %v204_v11, 1.0 }
  0xf6   :  { %v487_v47 = vadd.f32 1.0, %v578_v12 }
  0xf8   :  { %v495_v13 = vmul.f32 %v487_v47, %v151_v35 }
  0xfa   :  { %539 = vmatpush.msra.mxu1 %v495_v13 }
  0xfb   :  { %586 = vmatmul.msk.f32.vlgmr.msra.gmra.mxu1 %vm517_vm1, %v503_v41 }
 0x103   :  { %587 = vmatmul.msk.f32.gmra.mxu1 %vm517_vm1, %v504_v30 }
 0x178   :  { %v541_v14 = vpop.f32.mrf.mxu1 }
 0x179   :  { %v542_v4 = vadd.f32 %v541_v14, %v510_v32 }
 0x17b   :  { %548 = vst.msk [vmem:[#allocation2] sm:$0xff] %vm547_vm2, %v542_v4 }
 0x180   :  { %v544_v17 = vpop.f32.mrf.mxu1 }
 0x181   :  { %v545_v51 = vadd.f32 %v544_v17, %v515_v27 }
 0x183   :  { %549 = vst.msk [vmem:[#allocation2 + $0x8] sm:$0xff] %vm547_vm2, %v545_v51 }
 0x184   :  { %562 = dma.vmem_to_hbm [thread:$0]  %s555_s8, 256, %s557_s11, [#allocation3], %s643_s12, %s643_s12, %s644_s3  }
 0x185   :  { %639 = dma.done.wait [#allocation3], 256  }
 0x186   :  { %640 = vsyncadd [#allocation3], 4294967040 }
 0x187   :  { %567 = vsyncpa [#allocation3], 1 }

</bundles_post_ra>
